<compile_context>
chip_gen: v6e
topology: v6e:2x2x1
jax: 0.10.0
libtpu: 0.0.40
codegen_flags: <defaults>
</compile_context>

<pallas_src>
import functools

import jax
import jax.numpy as jnp
from jax.experimental import pallas as pl
from jax.experimental.pallas import tpu as pltpu


def _round_up(x, m):
    return (x + m - 1) // m * m


def _tpu_vmem_and_cores():
    """Best-effort probe of per-core VMEM capacity and TensorCore count."""
    vmem_cap = 64 << 20          # conservative default (v7x per-TC VMEM)
    cores = 1
    try:
        vmem_cap = int(pltpu.get_tpu_info().vmem_capacity_bytes)
    except Exception:
        pass
    try:
        kind = jax.devices()[0].device_kind.lower()
        if "v7" in kind:         # v7x: 2 TensorCores per chip
            cores = 2
    except Exception:
        pass
    return vmem_cap, cores


def _proxy_anchor_tile_kernel(t_ref, x_ref, pt_ref, psum_ref, nsum_ref,
                              cols_ref, nbias_ref, *, nb_classes, mrg, alpha):
    """One (class-tile, batch-tile) grid step.

    Inputs are already l2-normalized (and cast to the MXU dtype) in the wrapper.
    psum/nsum are resident (1, tile_c) accumulators across the batch axis.
    """
    ci = pl.program_id(0)              # class tile ("parallel")
    bi = pl.program_id(1)              # batch tile (reduction, "arbitrary")
    tile_c = psum_ref.shape[1]

    @pl.when(bi == 0)
    def _init():
        # Per-class-tile constants: global column ids and the negative-side
        # column bias (alpha*mrg for valid classes, -inf-ish for padded ones).
        cols = ci * tile_c + jax.lax.broadcasted_iota(jnp.int32, (1, tile_c), 1)
        cols_ref[...] = cols
        nbias_ref[...] = jnp.where(cols < nb_classes,
                                   jnp.float32(alpha * mrg), jnp.float32(-1e30))
        psum_ref[...] = jnp.zeros_like(psum_ref)
        nsum_ref[...] = jnp.zeros_like(nsum_ref)

    # Cosine similarities on the MXU: (tile_b, D) @ (D, tile_c), f32 accumulation.
    cos = jnp.dot(x_ref[...], pt_ref[...], preferred_element_type=jnp.float32)

    t = t_ref[...]                                     # (tile_b, 1) int32; -1 = pad row
    p_bool = cols_ref[...] == t                        # (tile_b, tile_c)
    p_oh = p_bool.astype(jnp.float32)

    # Positive side: exponentiate only the per-row positive cosine (tile_b exps,
    # not tile_b*tile_c), then scatter it back through the one-hot mask.
    pos_cos = jnp.sum(cos * p_oh, axis=1, keepdims=True)          # (tile_b, 1)
    exp_pos = jnp.exp(-alpha * (pos_cos - mrg))                   # (tile_b, 1)
    psum_ref[...] += jnp.sum(exp_pos * p_oh, axis=0, keepdims=True)

    # Negative side: padding masks folded into an additive bias on the exp
    # argument (exp(-1e30) == 0); positive entries zeroed with a single select.
    rbias = jnp.where(t >= 0, jnp.float32(0.0), jnp.float32(-1e30))   # (tile_b, 1)
    neg = jnp.exp(alpha * cos + nbias_ref[...] + rbias)
    nsum_ref[...] += jnp.sum(jnp.where(p_bool, jnp.float32(0.0), neg),
                             axis=0, keepdims=True)


def proxy_anchor_loss(X, proxies, T, *, nb_classes, mrg=0.1, alpha=32.0,
                      tile_b=None, tile_c=None, matmul_dtype=jnp.bfloat16):
    """Proxy-Anchor loss.  X: (B, D) float, proxies: (nb_classes, D), T: (B,) int."""
    B, D = X.shape
    C, Dp = proxies.shape
    assert Dp == D and C == nb_classes

    mm_bytes = jnp.dtype(matmul_dtype).itemsize
    sub_b = 16 if mm_bytes < 4 else 8                  # bf16 packs sublanes in pairs

    d_pad = _round_up(D, 128)
    vmem_cap, n_cores = _tpu_vmem_and_cores()
    big_vmem = vmem_cap >= (96 << 20)                  # v5e/v6e (128 MiB) vs v7x (64 MiB)

    if tile_b is None:
        tile_b = 512 if big_vmem else 256
    if tile_c is None:
        tile_c = 2048 if big_vmem else 1024

    tile_b = _round_up(min(tile_b, _round_up(B, sub_b)), sub_b)
    c_full = _round_up(C, 128)
    tile_c = _round_up(min(tile_c, c_full), 128)

    # v7x: make sure the "parallel" class axis has >= 1 tile per TensorCore.
    if n_cores > 1 and c_full >= n_cores * 128:
        tile_c = min(tile_c, _round_up(pl.cdiv(c_full, n_cores), 128))

    def est_vmem(tb, tc):
        return (2 * tb * d_pad * mm_bytes             # X tile, double-buffered
                + 2 * d_pad * tc * mm_bytes           # proxies^T tile, double-buffered
                + 2 * tb * 128 * 4                    # label tile (lane padded)
                + 2 * 2 * 8 * tc * 4                  # psum / nsum accumulators
                + 2 * 8 * tc * 4                      # col-id / neg-bias scratches
                + 6 * tb * tc * 4)                    # full-tile f32 temporaries

    budget = max(int(0.75 * vmem_cap), 32 << 20)
    while est_vmem(tile_b, tile_c) > budget:
        if tile_c > 256:
            tile_c = _round_up(tile_c // 2, 128)
        elif tile_b > 8 * sub_b:
            tile_b = _round_up(tile_b // 2, sub_b)
        else:
            break

    b_pad = _round_up(B, tile_b)
    c_pad = _round_up(C, tile_c)
    grid = (c_pad // tile_c, b_pad // tile_b)
    vmem_limit = int(min(max(int(1.5 * est_vmem(tile_b, tile_c)), 32 << 20), budget))

    # Normalize / pad / transpose / cast ONCE in the wrapper.  Padded rows/columns
    # stay exactly zero and are still masked in the kernel via label/column validity.
    Xp = jnp.zeros((b_pad, d_pad), jnp.float32).at[:B, :D].set(X.astype(jnp.float32))
    Xn = (Xp * jax.lax.rsqrt(jnp.sum(Xp * Xp, axis=1, keepdims=True) + 1e-12)
          ).astype(matmul_dtype)
    Pp = jnp.zeros((c_pad, d_pad), jnp.float32).at[:C, :D].set(proxies.astype(jnp.float32))
    Pn = Pp * jax.lax.rsqrt(jnp.sum(Pp * Pp, axis=1, keepdims=True) + 1e-12)
    PT = jnp.transpose(Pn).astype(matmul_dtype)        # (d_pad, c_pad): lane-dense classes
    Tp = jnp.full((b_pad, 1), -1, jnp.int32).at[:B, 0].set(T.astype(jnp.int32).reshape(B))

    kernel = functools.partial(_proxy_anchor_tile_kernel, nb_classes=nb_classes,
                               mrg=float(mrg), alpha=float(alpha))

    psum, nsum = pl.pallas_call(
        kernel,
        grid=grid,
        in_specs=[
            # Labels kept as a tiny VMEM (tile_b, 1) tile so the one-hot compare
            # stays a vector op (SMEM would force scalar loads).
            pl.BlockSpec((tile_b, 1), lambda ci, bi: (bi, 0)),       # labels
            pl.BlockSpec((tile_b, d_pad), lambda ci, bi: (bi, 0)),   # X (normalized)
            pl.BlockSpec((d_pad, tile_c), lambda ci, bi: (0, ci)),   # proxies^T (normalized)
        ],
        out_specs=[
            pl.BlockSpec((1, tile_c), lambda ci, bi: (0, ci)),       # pos_sim_sum
            pl.BlockSpec((1, tile_c), lambda ci, bi: (0, ci)),       # neg_sim_sum
        ],
        out_shape=[
            jax.ShapeDtypeStruct((1, c_pad), jnp.float32),
            jax.ShapeDtypeStruct((1, c_pad), jnp.float32),
        ],
        scratch_shapes=[
            pltpu.VMEM((1, tile_c), jnp.int32),      # global column ids (per class tile)
            pltpu.VMEM((1, tile_c), jnp.float32),    # negative-side column bias
        ],
        compiler_params=pltpu.CompilerParams(
            dimension_semantics=("parallel", "arbitrary"),
            vmem_limit_bytes=vmem_limit,
        ),
    )(Tp, Xn, PT)

    # Finalize: a few tiny reductions over (nb_classes,) -- plain jnp (per perf
    # review, a second pallas_call launch + DMA costs more than it saves).
    psum = psum[0, :nb_classes]
    nsum = nsum[0, :nb_classes]
    counts = jnp.zeros((nb_classes,), jnp.int32).at[T.astype(jnp.int32)].add(1)
    num_valid = jnp.sum(counts > 0).astype(jnp.float32)
    pos_term = jnp.sum(jnp.log1p(psum)) / num_valid
    neg_term = jnp.sum(jnp.log1p(nsum)) / jnp.float32(nb_classes)
    return pos_term + neg_term


def _reference_loss(X, proxies, T, *, nb_classes, mrg=0.1, alpha=32.0,
                    matmul_dtype=jnp.float32):
    """Pure-jnp reference mirroring the torch module (optionally with bf16 MXU operands)."""
    def l2n(v):
        return v / jnp.sqrt(jnp.sum(v * v, axis=1, keepdims=True) + 1e-12)
    xn = l2n(X).astype(matmul_dtype)
    pn = l2n(proxies).astype(matmul_dtype)
    cos = jnp.dot(xn, pn.T, preferred_element_type=jnp.float32)
    p_oh = jax.nn.one_hot(T, nb_classes, dtype=jnp.float32)
    pos_exp = jnp.exp(-alpha * (cos - mrg))
    neg_exp = jnp.exp(alpha * (cos + mrg))
    p_sum = jnp.sum(pos_exp * p_oh, axis=0)
    n_sum = jnp.sum(neg_exp * (1.0 - p_oh), axis=0)
    num_valid = jnp.sum(p_oh.sum(axis=0) != 0)
    pos_term = jnp.sum(jnp.log(1.0 + p_sum)) / num_valid
    neg_term = jnp.sum(jnp.log(1.0 + n_sum)) / nb_classes
    return pos_term + neg_term


if __name__ == "__main__":
    key = jax.random.PRNGKey(0)

    def run_case(nb_classes, sz_embed, batch, case_key, *, tile_b=None, tile_c=None,
                 matmul_dtype=jnp.bfloat16, rtol=1e-2, atol=2e-2):
        kx, kp, kt = jax.random.split(case_key, 3)
        X = jax.random.normal(kx, (batch, sz_embed), dtype=jnp.float32)
        # kaiming_normal_(mode='fan_out') on (nb_classes, sz_embed): std = sqrt(2/nb_classes)
        proxies = jax.random.normal(kp, (nb_classes, sz_embed), dtype=jnp.float32) * jnp.sqrt(
            2.0 / nb_classes)
        T = jax.random.randint(kt, (batch,), 0, nb_classes, dtype=jnp.int32)

        loss = proxy_anchor_loss(X, proxies, T, nb_classes=nb_classes, mrg=0.1,
                                 alpha=32.0, tile_b=tile_b, tile_c=tile_c,
                                 matmul_dtype=matmul_dtype)
        loss = jax.block_until_ready(loss)
        ref = _reference_loss(X, proxies, T, nb_classes=nb_classes, mrg=0.1, alpha=32.0,
                              matmul_dtype=matmul_dtype)
        assert jnp.allclose(loss, ref, rtol=rtol, atol=atol), (loss, ref)
        return loss

    k1, k2, k3 = jax.random.split(key, 3)
    # f32 MXU path, tight tolerance: batch padded 10 -> 16 (2 batch tiles of 8),
    # classes padded 5 -> 128 (1 class tile).
    run_case(nb_classes=5, sz_embed=32, batch=10, case_key=k1, tile_b=8, tile_c=128,
             matmul_dtype=jnp.float32, rtol=2e-3, atol=2e-3)
    # bf16 MXU path (default): 2 class tiles (130 -> 256) x 3 batch tiles (40 -> 48).
    run_case(nb_classes=130, sz_embed=48, batch=40, case_key=k2, tile_b=16, tile_c=128)
    # bf16 with the automatic (hardware-probed) tile plan.
    run_case(nb_classes=20, sz_embed=64, batch=32, case_key=k3)

    print("KERNEL_OK")
</pallas_src>

<mosaic_0001>
module attributes {stable_mosaic.version = 11 : i64} {
  func.func @_proxy_anchor_tile_kernel(%arg0: i32, %arg1: i32, %arg2: memref<8x1xi32, #tpu.memory_space<vmem>>, %arg3: memref<8x128xf32, #tpu.memory_space<vmem>>, %arg4: memref<128x128xf32, #tpu.memory_space<vmem>>, %arg5: memref<1x128xf32, #tpu.memory_space<vmem>>, %arg6: memref<1x128xf32, #tpu.memory_space<vmem>>, %arg7: memref<1x128xi32, #tpu.memory_space<vmem>>, %arg8: memref<1x128xf32, #tpu.memory_space<vmem>>) attributes {dimension_semantics = [#tpu.dimension_semantics<parallel>, #tpu.dimension_semantics<arbitrary>], iteration_bounds = array<i64: 1, 2>, scalar_prefetch = 0 : i64, scratch_operands = 2 : i64, tpu.core_type = #tpu.core_type<tc>, window_params = [{transform_indices = @transform_0, window_bounds = array<i64: 8, 1>}, {transform_indices = @transform_1, window_bounds = array<i64: 8, 128>}, {transform_indices = @transform_2, window_bounds = array<i64: 128, 128>}, {transform_indices = @transform_3, window_bounds = array<i64: 1, 128>}, {transform_indices = @transform_4, window_bounds = array<i64: 1, 128>}]} {
    %c0_i32 = arith.constant 0 : i32
    %0 = arith.cmpi eq, %arg1, %c0_i32 : i32
    %1 = arith.extui %0 : i1 to i32
    %c0_i32_0 = arith.constant 0 : i32
    %2 = arith.cmpi ne, %1, %c0_i32_0 : i32
    scf.if %2 {
      %c128_i32 = arith.constant 128 : i32
      %48 = arith.muli %arg0, %c128_i32 : i32
      %49 = tpu.iota {dimensions = array<i32: 1>} : vector<1x128xi32>
      %50 = vector.broadcast %48 : i32 to vector<1x128xi32>
      %51 = arith.addi %50, %49 : vector<1x128xi32>
      %c0_28 = arith.constant 0 : index
      %c0_29 = arith.constant 0 : index
      %52 = vector.load %arg7[%c0_28, %c0_29] : memref<1x128xi32, #tpu.memory_space<vmem>>, vector<1x128xi32>
      tpu.vector_store %arg7[%c0_28, %c0_29], %51 {strides = array<i32>} : memref<1x128xi32, #tpu.memory_space<vmem>>, vector<1x128xi32>,
      %c5_i32 = arith.constant 5 : i32
      %53 = vector.broadcast %c5_i32 : i32 to vector<1x128xi32>
      %54 = arith.cmpi slt, %51, %53 : vector<1x128xi32>
      %cst_30 = arith.constant 3.200000e+00 : f32
      %cst_31 = arith.constant -1.000000e+30 : f32
      %55 = vector.broadcast %cst_30 : f32 to vector<1x128xf32>
      %56 = vector.broadcast %cst_31 : f32 to vector<1x128xf32>
      %57 = arith.select %54, %55, %56 : vector<1x128xi1>, vector<1x128xf32>
      %c0_32 = arith.constant 0 : index
      %c0_33 = arith.constant 0 : index
      %58 = vector.load %arg8[%c0_32, %c0_33] : memref<1x128xf32, #tpu.memory_space<vmem>>, vector<1x128xf32>
      tpu.vector_store %arg8[%c0_32, %c0_33], %57 {strides = array<i32>} : memref<1x128xf32, #tpu.memory_space<vmem>>, vector<1x128xf32>,
      %cst_34 = arith.constant 0.000000e+00 : f32
      %59 = vector.broadcast %cst_34 : f32 to vector<1x128xf32>
      %c0_35 = arith.constant 0 : index
      %c0_36 = arith.constant 0 : index
      %60 = vector.load %arg5[%c0_35, %c0_36] : memref<1x128xf32, #tpu.memory_space<vmem>>, vector<1x128xf32>
      tpu.vector_store %arg5[%c0_35, %c0_36], %59 {strides = array<i32>} : memref<1x128xf32, #tpu.memory_space<vmem>>, vector<1x128xf32>,
      %cst_37 = arith.constant 0.000000e+00 : f32
      %61 = vector.broadcast %cst_37 : f32 to vector<1x128xf32>
      %c0_38 = arith.constant 0 : index
      %c0_39 = arith.constant 0 : index
      %62 = vector.load %arg6[%c0_38, %c0_39] : memref<1x128xf32, #tpu.memory_space<vmem>>, vector<1x128xf32>
      tpu.vector_store %arg6[%c0_38, %c0_39], %61 {strides = array<i32>} : memref<1x128xf32, #tpu.memory_space<vmem>>, vector<1x128xf32>,
    } else {
    }
    %c0 = arith.constant 0 : index
    %c0_1 = arith.constant 0 : index
    %3 = vector.load %arg3[%c0, %c0_1] : memref<8x128xf32, #tpu.memory_space<vmem>>, vector<8x128xf32>
    %c0_2 = arith.constant 0 : index
    %c0_3 = arith.constant 0 : index
    %4 = vector.load %arg4[%c0_2, %c0_3] : memref<128x128xf32, #tpu.memory_space<vmem>>, vector<128x128xf32>
    %cst = arith.constant dense<0.000000e+00> : vector<8x128xf32>
    %5 = tpu.matmul %3, %4, %cst {dimension_numbers = #tpu.dot_dimension_numbers<[1], [0], [0], [1], [0, 0, 1, 1], [], []>} : vector<8x128xf32>, vector<128x128xf32>, vector<8x128xf32> -> vector<8x128xf32>
    %c0_4 = arith.constant 0 : index
    %c0_5 = arith.constant 0 : index
    %6 = vector.load %arg2[%c0_4, %c0_5] : memref<8x1xi32, #tpu.memory_space<vmem>>, vector<8x1xi32>
    %c0_6 = arith.constant 0 : index
    %c0_7 = arith.constant 0 : index
    %7 = vector.load %arg7[%c0_6, %c0_7] : memref<1x128xi32, #tpu.memory_space<vmem>>, vector<1x128xi32>
    %8 = vector.broadcast %7 : vector<1x128xi32> to vector<8x128xi32>
    %9 = vector.broadcast %6 : vector<8x1xi32> to vector<8x128xi32>
    %10 = arith.cmpi eq, %8, %9 : vector<8x128xi32>
    %11 = arith.extui %10 : vector<8x128xi1> to vector<8x128xi32>
    %12 = arith.sitofp %11 : vector<8x128xi32> to vector<8x128xf32>
    %13 = arith.mulf %5, %12 : vector<8x128xf32>
    %cst_8 = arith.constant dense<0.000000e+00> : vector<8xf32>
    %14 = vector.multi_reduction <add>, %13, %cst_8 [1] : vector<8x128xf32> to vector<8xf32>
    %15 = vector.shape_cast %14 : vector<8xf32> to vector<8x1xf32>
    %cst_9 = arith.constant 1.000000e-01 : f32
    %16 = vector.broadcast %cst_9 : f32 to vector<8x1xf32>
    %17 = arith.subf %15, %16 : vector<8x1xf32>
    %cst_10 = arith.constant -3.200000e+01 : f32
    %18 = vector.broadcast %cst_10 : f32 to vector<8x1xf32>
    %19 = arith.mulf %18, %17 : vector<8x1xf32>
    %20 = math.exp %19 : vector<8x1xf32>
    %c0_11 = arith.constant 0 : index
    %c0_12 = arith.constant 0 : index
    %21 = vector.load %arg5[%c0_11, %c0_12] : memref<1x128xf32, #tpu.memory_space<vmem>>, vector<1x128xf32>
    %22 = vector.broadcast %20 : vector<8x1xf32> to vector<8x128xf32>
    %23 = arith.mulf %22, %12 : vector<8x128xf32>
    %cst_13 = arith.constant dense<0.000000e+00> : vector<128xf32>
    %24 = vector.multi_reduction <add>, %23, %cst_13 [0] : vector<8x128xf32> to vector<128xf32>
    %25 = vector.shape_cast %24 : vector<128xf32> to vector<1x128xf32>
    %26 = arith.addf %21, %25 : vector<1x128xf32>
    %c0_14 = arith.constant 0 : index
    %c0_15 = arith.constant 0 : index
    %27 = vector.load %arg5[%c0_14, %c0_15] : memref<1x128xf32, #tpu.memory_space<vmem>>, vector<1x128xf32>
    tpu.vector_store %arg5[%c0_14, %c0_15], %26 {strides = array<i32>} : memref<1x128xf32, #tpu.memory_space<vmem>>, vector<1x128xf32>,
    %c0_i32_16 = arith.constant 0 : i32
    %28 = vector.broadcast %c0_i32_16 : i32 to vector<8x1xi32>
    %29 = arith.cmpi sge, %6, %28 : vector<8x1xi32>
    %cst_17 = arith.constant 0.000000e+00 : f32
    %cst_18 = arith.constant -1.000000e+30 : f32
    %30 = vector.broadcast %cst_17 : f32 to vector<8x1xf32>
    %31 = vector.broadcast %cst_18 : f32 to vector<8x1xf32>
    %32 = arith.select %29, %30, %31 : vector<8x1xi1>, vector<8x1xf32>
    %cst_19 = arith.constant 3.200000e+01 : f32
    %33 = vector.broadcast %cst_19 : f32 to vector<8x128xf32>
    %34 = arith.mulf %33, %5 : vector<8x128xf32>
    %c0_20 = arith.constant 0 : index
    %c0_21 = arith.constant 0 : index
    %35 = vector.load %arg8[%c0_20, %c0_21] : memref<1x128xf32, #tpu.memory_space<vmem>>, vector<1x128xf32>
    %36 = vector.broadcast %35 : vector<1x128xf32> to vector<8x128xf32>
    %37 = arith.addf %34, %36 : vector<8x128xf32>
    %38 = vector.broadcast %32 : vector<8x1xf32> to vector<8x128xf32>
    %39 = arith.addf %37, %38 : vector<8x128xf32>
    %40 = math.exp %39 : vector<8x128xf32>
    %c0_22 = arith.constant 0 : index
    %c0_23 = arith.constant 0 : index
    %41 = vector.load %arg6[%c0_22, %c0_23] : memref<1x128xf32, #tpu.memory_space<vmem>>, vector<1x128xf32>
    %cst_24 = arith.constant 0.000000e+00 : f32
    %42 = vector.broadcast %cst_24 : f32 to vector<8x128xf32>
    %43 = arith.select %10, %42, %40 : vector<8x128xi1>, vector<8x128xf32>
    %cst_25 = arith.constant dense<0.000000e+00> : vector<128xf32>
    %44 = vector.multi_reduction <add>, %43, %cst_25 [0] : vector<8x128xf32> to vector<128xf32>
    %45 = vector.shape_cast %44 : vector<128xf32> to vector<1x128xf32>
    %46 = arith.addf %41, %45 : vector<1x128xf32>
    %c0_26 = arith.constant 0 : index
    %c0_27 = arith.constant 0 : index
    %47 = vector.load %arg6[%c0_26, %c0_27] : memref<1x128xf32, #tpu.memory_space<vmem>>, vector<1x128xf32>
    tpu.vector_store %arg6[%c0_26, %c0_27], %46 {strides = array<i32>} : memref<1x128xf32, #tpu.memory_space<vmem>>, vector<1x128xf32>,
    return
  }
  func.func @transform_0(%arg0: i32, %arg1: i32) -> (i32, i32) {
    %c0_i32 = arith.constant 0 : i32
    %c0_i32_0 = arith.constant 0 : i32
    return %arg1, %c0_i32 : i32, i32
  }
  func.func @transform_1(%arg0: i32, %arg1: i32) -> (i32, i32) {
    %c0_i32 = arith.constant 0 : i32
    %c0_i32_0 = arith.constant 0 : i32
    return %arg1, %c0_i32 : i32, i32
  }
  func.func @transform_2(%arg0: i32, %arg1: i32) -> (i32, i32) {
    %c0_i32 = arith.constant 0 : i32
    %c0_i32_0 = arith.constant 0 : i32
    return %c0_i32, %arg0 : i32, i32
  }
  func.func @transform_3(%arg0: i32, %arg1: i32) -> (i32, i32) {
    %c0_i32 = arith.constant 0 : i32
    %c0_i32_0 = arith.constant 0 : i32
    return %c0_i32, %arg0 : i32, i32
  }
  func.func @transform_4(%arg0: i32, %arg1: i32) -> (i32, i32) {
    %c0_i32 = arith.constant 0 : i32
    %c0_i32_0 = arith.constant 0 : i32
    return %c0_i32, %arg0 : i32, i32
  }
}

</mosaic_0001>

<bundles_post_ra>
// kernel: tpu_custom_call.1
= control target key start
LH: loop header
LB: loop body
LE: loop exit
PB: predicated region body
PF: predicated region fallthrough
CT: control target
= control target key end

     0   :  { %10 = vsyncpa [#allocation5], 0  ;;  %s903_s0 = inlined_call_operand.vmem [shape: s32[16,1], index: 0, kind: input, shape index: {}]   ;;  %s904_s1 = inlined_call_operand.vmem [shape: f32[16,128], index: 1, kind: input, shape index: {}]   ;;  %s905_s2 = inlined_call_operand.hbm [shape: f32[128,128], index: 2, kind: input, shape index: {}]   ;;  %s906_s3 = inlined_call_operand.hbm [shape: f32[1,128], index: 3, kind: output, shape index: {0}]   ;;  %s907_s4 = inlined_call_operand.hbm [shape: f32[1,128], index: 4, kind: output, shape index: {1}]  }
   0x1   :  { %11 = vsyncpa [#allocation6], 0 }
   0x2   :  { %12 = vsyncpa [#allocation9], 0  ;;  %s792_s15 = smov 0   ;;  %s794_s16 = smov 0  }
   0x3   :  { %s796_s17 = smov 0  }
   0x4 LB: > { %s512_s18 = sadd.s32 4294967295, %s754_s17   ;;  %s27_s19 = sadd.s32 1, %s750_s16  ;;  %s754_s17 = sphi %s796_s17, %s18_s17   ;;  %s750_s16 = sphi %s794_s16, %s912_s16   ;;  %s746_s15 = sphi %s792_s15, %s911_s15  }
   0x5   : > { %p28_p0 = scmp.ge.s32.totalorder %s27_s19, 2  ;;  %p513_p1 = scmp.ge.s32.totalorder %s754_s17, 1 }
   0x6   : > { %p165_p2 = scmp.lt.s32.totalorder %s754_s17, 3  ;;  %p819_p4 = scmp.eq.s32.totalorder %s512_s18, 0 }
   0x7   : > { %s914_s19 = smov (%p28_p0, %s27_s19), 0  ;;  %s756_s22 = smov [#allocation4]  }
   0x8   : > { %p813_p3 = pnand %p513_p1, %p165_p2  ;;  %s179_s23 = sshll.u32 %s756_s22, 4  ;;  %s180_s23 = int_to_ptr.vmem [resolvable:$true] %s179_s23 }
   0x9   : > { %s657_s24 = scalar_lea.vmem %s180_s23, 2048  ;;  %p665_p11 = scmp.lt.s32.totalorder %s180_s23, %s180_s23 }
   0xa   : > { %p595_p5 = pneg %p813_p3  ;;  %p658_p8 = scmp.ne.s32.totalorder %s180_s23, %s657_s24 }
   0xb   : > { %p666_p12 = scmp.lt.s32.totalorder %s657_s24, %s657_s24 }
   0xc   : > { %p596_p6 = pnand %p819_p4, %p595_p5 }
   0xd   : > { %p667_p13 = por %p666_p12, %p665_p11 }
   0xe   : > { %p648_p7 = pneg %p596_p6 }
  0x10   : > { %p660_p9 = pnand %p658_p8, %p648_p7 }
  0x12   : > { %p661_p10 = pneg %p660_p9 }
  0x14   : > { %p668_p0 = pnand %p667_p13, %p661_p10 }
  0x16   : > { %671 = shalt.err (!%p668_p0)
}
  0x17   : > { %s757_s25 = smov 128   ;;  %s758_s26 = smov 8  }
  0x18   : > { %598 = dma.hbm_to_vmem [thread:$0]  (!%p596_p6), %s905_s2, 2048, %s180_s23, [#allocation5], %s757_s25, %s757_s25, %s758_s26  }
  0x19   : > { %209 = sbr.rel (%p813_p3) target bundleno = 455 (0x1c7), region = 32 }
  0x1e   : > { %733 = dma.done.wait (%p819_p4), [#allocation5], 2048  }
  0x1f   : > { %735 = vsyncadd (%p819_p4), [#allocation5], 4294965248  ;;  %p233_p1 = scmp.lt.s32.totalorder %s746_s15, 1  ;;  %p520_p2 = scmp.ne.s32.totalorder %s746_s15, 0 }
  0x21   : > { %s234_s29 = scalar_select %p233_p1, %s746_s15, 1 }
  0x22   : > { %244 = sbr.rel (%p520_p2) target bundleno = 46 (0x2e), region = 40 }
  0x23   : > { %s518_s30 = sshll.u32 %s234_s29, 3 }
  0x24   : > { %s236_s7 = scalar_lea.vmem %s903_s0, %s518_s30  ;;  %s844_s10 = scalar_lea.vmem %s904_s1, %s518_s30 }
  0x27   : > { %v246_v0 = vlaneseq  ;;  %v759_v1 = vmov 0.0   ;;  %v760_v3 = vmov -1e+30  }
  0x28   : > { %254 = vst [vmem:[#allocation7] sm:$0x1] %v759_v1  ;;  %255 = vst [vmem:[#allocation8] sm:$0x1] %v759_v1 }
  0x29   : > { %v247_v2 = vand.u32 127, %v246_v0 }
  0x2b   : > { %250 = vst [vmem:[#allocation2] sm:$0x1] %v247_v2  ;;  %vm251_vm0 = vcmp.lt.s32.totalorder %v247_v2, 5 }
  0x2c   : > { %v252_v4 = vsel %vm251_vm0, 3.2, %v760_v3 }
  0x2d   : > { %253 = vst [vmem:[#allocation3] sm:$0x1] %v252_v4 }
  0x2e PF: > { %v272_v5 = vld [vmem:[#allocation4 + $0x78] sm:$0xff]  ;;  %v761_v6 = vmov 0.0   ;;  %v271_v7 = vld [vmem:[#allocation4 + $0x70] sm:$0xff]  ;;  %vm762_vm1 = vmmov 0   ;;  %v763_v8 = vmov 0   ;;  %v270_v9 = vld [vmem:[#allocation4 + $0x68] sm:$0xff] }
  0x2f   : > { %548 = vmatprep.subr.mxu0 %v761_v6  ;;  %580 = vmatprep.mubr.msk.f32.mxu0 %vm762_vm1, %v761_v6  ;;  %v269_v10 = vld [vmem:[#allocation4 + $0x60] sm:$0xff]  ;;  %v268_v12 = vld [vmem:[#allocation4 + $0x58] sm:$0xff]  ;;  %v764_v13 = vmov -1e+30   ;;  %v267_v15 = vld [vmem:[#allocation4 + $0x50] sm:$0xff]  ;;  %p868_p3 = scmp.eq.s32.totalorder %s512_s18, 1 }
  0x30   : > { %549 = vmatpush3.msra.mxu0 %v272_v5  ;;  %640 = vset.pattern.permute.xlu0 %v763_v8  ;;  %v343_v11 = vld [vmem:[%s236_s7] sm:$0xff]  ;;  %v266_v16 = vld [vmem:[#allocation4 + $0x48] sm:$0xff]  ;;  %v263_v19 = vld [vmem:[#allocation4 + $0x30] sm:$0xff]  ;;  %s765_s12 = smov [#allocation8]  }
  0x31   : > { %550 = vmatprep.subr.mxu0 %v761_v6  ;;  %641 = vset.pattern.permute.xlu1 %v763_v8  ;;  %vm372_vm2 = vcmp.ge.s32.totalorder %v343_v11, 0  ;;  %v265_v17 = vld [vmem:[#allocation4 + $0x40] sm:$0xff]  ;;  %v264_v18 = vld [vmem:[#allocation4 + $0x38] sm:$0xff]  ;;  %v262_v20 = vld [vmem:[#allocation4 + $0x28] sm:$0xff]  ;;  %s423_s13 = sshll.u32 %s765_s12, 4  ;;  %s424_s13 = int_to_ptr.vmem [resolvable:$true] %s423_s13 }
  0x32   : > { %551 = vmatpush3.msra.mxu0 %v271_v7  ;;  %350 = vperm.xlu0 %640, %v343_v11   ;;  %v373_v14 = vsel %vm372_vm2, 0.0, %v764_v13  ;;  %v261_v21 = vld [vmem:[#allocation4 + $0x20] sm:$0xff]  ;;  %v260_v22 = vld [vmem:[#allocation4 + $0x18] sm:$0xff]  ;;  %v259_v23 = vld [vmem:[#allocation4 + $0x10] sm:$0xff]  ;;  %s672_s14 = scalar_lea.vmem %s424_s13, 16  ;;  %s678_s15 = scalar_lea.vmem %s424_s13, 32 }
  0x33   : > { %552 = vmatprep.subr.mxu0 %v761_v6  ;;  %385 = vperm.xlu1 %641, %v373_v14   ;;  %v258_v24 = vld [vmem:[#allocation4 + $0x8] sm:$0xff]  ;;  %v257_v25 = vld [vmem:[#allocation4] sm:$0xff]  ;;  %v521_v27 = vld [vmem:[#allocation2] ss:$0 sm:$0xff]  ;;  %p673_p4 = scmp.ne.s32.totalorder %s424_s13, %s672_s14  ;;  %p679_p7 = scmp.lt.s32.totalorder %s424_s13, %s424_s13 }
  0x34   : > { %553 = vmatpush3.msra.mxu0 %v270_v9  ;;  %v256_v26 = vld [vmem:[%s844_s10] sm:$0xff]  ;;  %p680_p8 = scmp.lt.s32.totalorder %s678_s15, %s672_s14 }
  0x35   : > { %554 = vmatprep.subr.mxu0 %v761_v6  ;;  %v524_v31 = vld [vmem:[#allocation3] ss:$0 sm:$0xff]  ;;  %v391_v46 = vld [vmem:[#allocation8] sm:$0x1]  ;;  %p674_p5 = pnand %p673_p4, %p868_p3 }
  0x36   : > { %555 = vmatpush3.msra.mxu0 %v269_v10  ;;  %p681_p9 = por %p680_p8, %p679_p7 }
  0x37   : > { %556 = vmatprep.subr.mxu0 %v761_v6  ;;  %p675_p6 = pneg %p674_p5 }
  0x38   : > { %557 = vmatpush3.msra.mxu0 %v268_v12 }
  0x39   : > { %558 = vmatprep.subr.mxu0 %v761_v6  ;;  %p682_p10 = pnand %p681_p9, %p675_p6 }
  0x3a   : > { %559 = vmatpush3.msra.mxu0 %v267_v15 }
  0x3b   : > { %560 = vmatprep.subr.mxu0 %v761_v6 }
  0x3c   : > { %561 = vmatpush3.msra.mxu0 %v266_v16 }
  0x3d   : > { %562 = vmatprep.subr.mxu0 %v761_v6 }
  0x3e   : > { %563 = vmatpush3.msra.mxu0 %v265_v17 }
  0x3f   : > { %564 = vmatprep.subr.mxu0 %v761_v6 }
  0x40   : > { %565 = vmatpush3.msra.mxu0 %v264_v18 }
  0x41   : > { %566 = vmatprep.subr.mxu0 %v761_v6 }
  0x42   : > { %567 = vmatpush3.msra.mxu0 %v263_v19 }
  0x43   : > { %568 = vmatprep.subr.mxu0 %v761_v6 }
  0x44   : > { %569 = vmatpush3.msra.mxu0 %v262_v20 }
  0x45   : > { %570 = vmatprep.subr.mxu0 %v761_v6 }
  0x46   : > { %571 = vmatpush3.msra.mxu0 %v261_v21 }
  0x47   : > { %572 = vmatprep.subr.mxu0 %v761_v6 }
  0x48   : > { %573 = vmatpush3.msra.mxu0 %v260_v22 }
  0x49   : > { %574 = vmatprep.subr.mxu0 %v761_v6 }
  0x4a   : > { %575 = vmatpush3.msra.mxu0 %v259_v23 }
  0x4b   : > { %576 = vmatprep.subr.mxu0 %v761_v6 }
  0x4c   : > { %577 = vmatpush3.msra.mxu0 %v258_v24 }
  0x4d   : > { %578 = vmatprep.subr.mxu0 %v761_v6 }
  0x4e   : > { %579 = vmatpush3.msra.mxu0 %v257_v25 }
  0x4f   : > { %581 = vmatmul.mubr.f32.vlgmr.msra.gmra.mxu0 %v256_v26 }
  0xad   : > { %v351_v28 = vpop.permute.xlu0 %350 }
  0xae   : > { %vm352_vm3 = vcmp.eq.s32.totalorder %v521_v27, %v351_v28  ;;  %v386_v35 = vpop.permute.xlu1 %385 }
  0xaf   : > { %v522_v29 = vsel %vm352_vm3, 1.0, %v761_v6 }
 0x10f   : > { %v339_v30 = vpop.f32.mrf.mxu0 }
 0x110   : > { %v374_v32 = vmul.f32 32.0, %v339_v30  ;;  %v355_v33 = vmul.f32 %v522_v29, %v339_v30 }
 0x111   : > { %v582_v34 = vpop.f32.mrf.mxu0 }
 0x112   : > { %356 = vadd.xlane.f32.xlu0 %v355_v33  ;;  %v382_v36 = vadd.f32 %v524_v31, %v374_v32 }
 0x114   : > { %v388_v37 = vadd.f32 %v386_v35, %v382_v36 }
 0x116   : > { %v389_v38 = vmul.f32 1.442695, %v388_v37 }
 0x118   : > { %642 = vpow2.f32 %v389_v38 }
 0x125   : > { %v643_v39 = vpop.eup %642 }
 0x126   : > { %v392_v40 = vsel %vm352_vm3, 0.0, %v643_v39 }
 0x127   : > { %v393_v41 = vrot.slane %v392_v40, 4 }
 0x129   : > { %v394_v42 = vadd.f32 %v393_v41, %v392_v40 }
 0x12b   : > { %v395_v43 = vrot.slane %v394_v42, 2 }
 0x12d   : > { %v396_v44 = vadd.f32 %v395_v43, %v394_v42 }
 0x12f   : > { %v397_v45 = vrot.slane %v396_v44, 1 }
 0x131   : > { %v398_v47 = vadd.f32 %v397_v45, %v396_v44 }
 0x133   : > { %v399_v48 = vadd.f32 %v398_v47, %v391_v46 }
 0x135   : > { %400 = vst [vmem:[#allocation8] sm:$0x1] %v399_v48 }
 0x136   : > { %685 = shalt.err (!%p682_p10)
}
 0x137   : > { %590 = dma.vmem_to_hbm [thread:$0]  (%p868_p3), %s424_s13, 16, %s907_s4, [#allocation9]   ;;  %v362_v60 = vld [vmem:[#allocation7] sm:$0x1] }
 0x138   : > { %s766_s21 = smov [#allocation7]  }
 0x139   : > { %s410_s22 = sshll.u32 %s766_s21, 4  ;;  %s411_s22 = int_to_ptr.vmem [resolvable:$true] %s410_s22 }
 0x13a   : > { %s696_s23 = scalar_lea.vmem %s411_s22, 16  ;;  %s702_s24 = scalar_lea.vmem %s411_s22, 32 }
 0x13b   : > { %p697_p11 = scmp.ne.s32.totalorder %s411_s22, %s696_s23  ;;  %p703_p0 = scmp.lt.s32.totalorder %s411_s22, %s411_s22 }
 0x13c   : > { %p704_p1 = scmp.lt.s32.totalorder %s702_s24, %s696_s23 }
 0x13d   : > { %p698_p12 = pnand %p697_p11, %p868_p3 }
 0x13e   : > { %p705_p2 = por %p704_p1, %p703_p0 }
 0x13f   : > { %p699_p13 = pneg %p698_p12 }
 0x141   : > { %p706_p4 = pnand %p705_p2, %p699_p13 }
 0x19b   : > { %v357_v49 = vpop.xlane.xlu0 %356 }
 0x19c   : > { %v523_v50 = vadd.f32 -0.1, %v357_v49 }
 0x19e   : > { %v359_v51 = vmul.f32 -32.0, %v523_v50 }
 0x1a0   : > { %v360_v52 = vmul.f32 1.442695, %v359_v51 }
 0x1a2   : > { %644 = vpow2.f32 %v360_v52 }
 0x1af   : > { %v645_v53 = vpop.eup %644 }
 0x1b0   : > { %v363_v54 = vmul.f32 %v645_v53, %v522_v29 }
 0x1b2   : > { %v364_v55 = vrot.slane %v363_v54, 4 }
 0x1b4   : > { %v365_v56 = vadd.f32 %v364_v55, %v363_v54 }
 0x1b6   : > { %v366_v57 = vrot.slane %v365_v56, 2 }
 0x1b8   : > { %v367_v58 = vadd.f32 %v366_v57, %v365_v56 }
 0x1ba   : > { %v368_v59 = vrot.slane %v367_v58, 1 }
 0x1bc   : > { %v369_v61 = vadd.f32 %v368_v59, %v367_v58 }
 0x1be   : > { %v370_v62 = vadd.f32 %v369_v61, %v362_v60 }
 0x1c0   : > { %371 = vst [vmem:[#allocation7] sm:$0x1] %v370_v62 }
 0x1c1   : > { %709 = shalt.err (!%p706_p4)
}
 0x1c2   : > { %588 = dma.vmem_to_hbm [thread:$0]  (%p868_p3), %s411_s22, 16, %s906_s3, [#allocation6]  }
 0x1c3   : > { %737 = dma.done.wait (%p868_p3), [#allocation6], 16  }
 0x1c4   : > { %739 = vsyncadd (%p868_p3), [#allocation6], 4294967280 }
 0x1c5   : > { %741 = dma.done.wait (%p868_p3), [#allocation9], 16  }
 0x1c6   : > { %743 = vsyncadd (%p868_p3), [#allocation9], 4294967280 }
 0x1c7 PF: > { %s18_s17 = sadd.s32 1, %s754_s17   ;;  %s911_s15 = smov %s750_s16 }
 0x1c8   : > { %p15_p5 = scmp.ge.s32.totalorder %s18_s17, 4   ;;  %s912_s16 = smov %s914_s19 }
 0x1ca   :  { %17 = sbr.rel (!%p15_p5) target bundleno = 4 (0x4), region = 82 }
 0x1cf   :  { %440 = vsyncpa [#allocation5], 1 }
 0x1d0   :  { %442 = vsyncpa [#allocation5 + $0x1], 1 }
 0x1d1   :  { %443 = vsyncpa [#allocation6], 1 }
 0x1d2   :  { %445 = vsyncpa [#allocation6 + $0x1], 1 }
 0x1d3   :  { %446 = vsyncpa [#allocation9], 1 }

</bundles_post_ra>
